<compile_context>
chip_gen: v7x
topology: tpu7x:2x2x1
jax: 0.10.0
libtpu: 0.0.40
codegen_flags: <defaults>
</compile_context>

<pallas_src>
import functools

import jax
import jax.numpy as jnp
from jax.experimental import pallas as pl
from jax.experimental.pallas import tpu as pltpu

_LANE = 128
_DEFAULT_TILE = 512  # lane tile; 512 is near the pipelining sweet spot


def _choose_tile(hw, target=_DEFAULT_TILE):
    """Pick a lane tile (multiple of 128) and the padded HW it implies."""
    hw128 = ((hw + _LANE - 1) // _LANE) * _LANE
    t = min(target, hw128)
    hw_pad = ((hw + t - 1) // t) * t
    return t, hw_pad


def _dice_sums_kernel(logits_ref, labels_ref, inter_ref, psum_ref, lsum_ref,
                      *, hw, t):
    """One (batch b, HW tile k) step.

    logits_ref: (1, C, T) float (f32 or bf16; upcast here)
    labels_ref: (1, 1, T) int32 label ids; anything outside [0, C) matches no
                channel (reproduces an all-zero one-hot row / ignore label).
    inter/psum/lsum_ref: (1, C, 128) f32 lane-folded accumulators, resident
                across the HW ("arbitrary") grid axis.
    """
    k = pl.program_id(1)
    C = logits_ref.shape[1]
    n_chunks = t // _LANE

    @pl.when(k == 0)
    def _():
        inter_ref[...] = jnp.zeros_like(inter_ref)
        psum_ref[...] = jnp.zeros_like(psum_ref)
        lsum_ref[...] = jnp.zeros_like(lsum_ref)

    x = logits_ref[0].astype(jnp.float32)                     # (C, T)

    # channel softmax: one exp per element, ONE reciprocal per pixel
    m = jnp.max(x, axis=0, keepdims=True)                     # (1, T)
    e = jnp.exp(x - m)                                        # (C, T)
    z = jnp.sum(e, axis=0, keepdims=True)                     # (1, T)
    inv_z = pl.reciprocal(z, approx=False)                    # exact; 1/pixel
    p = e * inv_z                                             # (C, T)

    # channel-match mask without materializing a full one-hot tensor
    lbl = labels_ref[0]                                       # (1, T) int32
    ch = jax.lax.broadcasted_iota(jnp.int32, (C, 1), 0)       # (C, 1)
    match = ch == lbl                                         # (C, T) bool

    if hw % t != 0:
        # only needed when HW was padded up to a tile multiple
        pos = k * t + jax.lax.broadcasted_iota(jnp.int32, (1, t), 1)
        valid = pos < hw                                      # (1, T)
        p = jnp.where(valid, p, jnp.float32(0.0))
        match = jnp.logical_and(match, valid)

    inter_c = jnp.where(match, p, jnp.float32(0.0))           # (C, T)
    lsum_c = jnp.where(match, jnp.float32(1.0), jnp.float32(0.0))

    def fold(a):
        # T lanes -> 128 lanes with vreg-aligned static slices + vector adds
        acc = a[:, 0:_LANE]
        for j in range(1, n_chunks):
            acc = acc + a[:, j * _LANE:(j + 1) * _LANE]
        return acc

    inter_ref[0] = inter_ref[0] + fold(inter_c)
    psum_ref[0] = psum_ref[0] + fold(p)
    lsum_ref[0] = lsum_ref[0] + fold(lsum_c)


def _dice_sums_call(logits_bchw_flat, labels_b1hw, *, hw, t):
    """Returns lane-folded (B, C, 128) partial sums: inter, psum, lsum."""
    B, C, hw_pad = logits_bchw_flat.shape
    K = hw_pad // t
    c_pad = ((C + 7) // 8) * 8  # sublane padding of the (C, T) slabs

    in_spec_logits = pl.BlockSpec((1, C, t), lambda b, k: (b, 0, k))
    in_spec_labels = pl.BlockSpec((1, 1, t), lambda b, k: (b, 0, k))
    out_block = pl.BlockSpec((1, C, _LANE), lambda b, k: (b, 0, 0))

    grid_spec = pltpu.PrefetchScalarGridSpec(
        num_scalar_prefetch=0,
        grid=(B, K),
        in_specs=[in_spec_logits, in_spec_labels],
        out_specs=[out_block, out_block, out_block],
    )

    # VMEM budget (acknowledging C -> 8 sublane padding): double-buffered
    # input tiles + double-buffered accumulator outputs + ~8 tile-sized f32
    # temporaries of headroom.  Stays far below v7x's 32 MiB scoped default.
    itemsize = logits_bchw_flat.dtype.itemsize
    in_bytes = 2 * (c_pad * t * itemsize + 8 * t * 4)          # per buffer
    vmem_need = 2 * in_bytes + 3 * 2 * c_pad * _LANE * 4 + 8 * c_pad * t * 4
    vmem_limit = int(min(64 * 2**20, max(8 * 2**20, 2 * vmem_need)))

    cost = pl.CostEstimate(
        flops=int(10 * B * C * hw_pad),
        transcendentals=int(B * (C + 1) * hw_pad),             # exp + recip
        bytes_accessed=int(logits_bchw_flat.size * itemsize
                           + labels_b1hw.size * 4
                           + 3 * B * C * _LANE * 4),
    )

    out_shape = tuple(jax.ShapeDtypeStruct((B, C, _LANE), jnp.float32)
                      for _ in range(3))
    return pl.pallas_call(
        functools.partial(_dice_sums_kernel, hw=hw, t=t),
        out_shape=out_shape,
        grid_spec=grid_spec,
        compiler_params=pltpu.CompilerParams(
            dimension_semantics=("parallel", "arbitrary"),
            vmem_limit_bytes=vmem_limit),
        cost_estimate=cost,
    )(logits_bchw_flat, labels_b1hw)


def _combine_dice(inter, psum, lsum, class_weights):
    """Tiny (B, C) combination mirroring the torch channel loop."""
    eps = jnp.float32(1e-6)  # torch hard-codes prevent_0_crash; smooth unused
    dice = (2.0 * inter + eps) / (psum + lsum + eps)           # (B, C)
    per_ch = 1.0 - jnp.mean(dice, axis=0)                      # (C,)
    if class_weights is not None:
        per_ch = per_ch * class_weights                        # torch: post 1-mean, no renorm
    present = jnp.sum(lsum, axis=0) != 0.0                     # torch `continue`
    total = jnp.sum(jnp.where(present, per_ch, 0.0))
    counted = jnp.sum(present.astype(jnp.float32))
    # torch would raise ZeroDivisionError when no channel is present; return 0.
    return total / jnp.maximum(counted, 1.0)


def modded_dice_loss_from_labels(logits, labels, class_weights=None,
                                 smooth=1e-6, ignore_index=255):
    """Optimized entry point: logits (B, C, H, W), labels (B, H, W) int ids.

    Label ids outside [0, C) (e.g. -1 or ignore_index) match no channel and
    contribute nothing to intersection / label sums (their softmax mass still
    counts toward the union term, exactly like the torch forward).  `smooth`
    and `ignore_index` are accepted for API parity only.
    """
    B, C, H, W = logits.shape
    hw = H * W
    t, hw_pad = _choose_tile(hw)

    logits_f = logits.reshape(B, C, hw)          # free reshape; dtype kept (bf16 OK)
    labels_i = jnp.asarray(labels).astype(jnp.int32).reshape(B, 1, hw)
    if hw_pad != hw:
        logits_f = jnp.pad(logits_f, ((0, 0), (0, 0), (0, hw_pad - hw)))
        labels_i = jnp.pad(labels_i, ((0, 0), (0, 0), (0, hw_pad - hw)),
                           constant_values=-1)

    inter_p, psum_p, lsum_p = _dice_sums_call(logits_f, labels_i, hw=hw, t=t)
    inter = jnp.sum(inter_p, axis=-1)            # (B, C) — tiny epilogue reductions
    psum = jnp.sum(psum_p, axis=-1)
    lsum = jnp.sum(lsum_p, axis=-1)

    cw = None
    if class_weights is not None:
        cw = jnp.asarray(class_weights, dtype=jnp.float32).reshape(C)
    return _combine_dice(inter, psum, lsum, cw)


def modded_dice_loss(logits, targets_nhwc, class_weights=None,
                     smooth=1e-6, ignore_index=255):
    """Matches ModdedDiceLoss.forward: logits (B,C,H,W), targets (B,H,W,C) one-hot.

    One-hot NHWC targets are converted to integer label ids (Cx less HBM data,
    no NHWC->NCHW transpose pass); all-zero rows map to label -1 which
    reproduces a zero one-hot row exactly.
    """
    # TODO(synk): soft / non-binary float targets would need a float-target
    # kernel variant; the module's intended one-hot input is matched exactly.
    labels = jnp.argmax(targets_nhwc, axis=-1).astype(jnp.int32)
    has_label = jnp.sum(targets_nhwc, axis=-1) != 0
    labels = jnp.where(has_label, labels, -1)
    return modded_dice_loss_from_labels(logits, labels, class_weights,
                                        smooth, ignore_index)
    # TODO(synk): debug_saver (.npy file I/O) and the call_counter side effect
    # are host-side debugging and intentionally not implemented here.


def _reference_loss(logits, targets_nhwc, class_weights=None):
    """Pure-JAX transliteration of the PyTorch forward (for validation)."""
    probs = jax.nn.softmax(logits, axis=1)
    targets = jnp.transpose(targets_nhwc, (0, 3, 1, 2)).astype(jnp.float32)
    total = 0.0
    counted = 0
    for c in range(logits.shape[1]):
        labels = targets[:, c]
        pred = probs[:, c]
        if float(labels.sum()) == 0.0:
            continue
        inter = (pred * labels).sum(axis=(1, 2))
        union = pred.sum(axis=(1, 2)) + labels.sum(axis=(1, 2))
        ds = (2.0 * inter + 1e-6) / (union + 1e-6)
        dl = 1.0 - ds.mean()
        if class_weights is not None:
            dl = dl * class_weights[c]
        total += dl
        counted += 1
    return total / counted


if __name__ == "__main__":
    B, C, H, W = 2, 4, 16, 16
    key = jax.random.PRNGKey(0)
    k_logits, k_labels = jax.random.split(key)

    logits = jax.random.normal(k_logits, (B, C, H, W), dtype=jnp.float32)
    label_ids = jax.random.randint(k_labels, (B, H, W), 0, C)
    targets = jax.nn.one_hot(label_ids, C, dtype=jnp.float32)   # (B, H, W, C)

    # 1) one-hot entry point vs reference
    loss = jax.block_until_ready(modded_dice_loss(logits, targets))
    ref = _reference_loss(logits, targets)
    assert jnp.isfinite(loss), "loss is not finite"
    assert abs(float(loss) - float(ref)) < 1e-5, (float(loss), float(ref))

    # 2) label-id entry point
    loss_lbl = jax.block_until_ready(
        modded_dice_loss_from_labels(logits, label_ids))
    assert abs(float(loss_lbl) - float(ref)) < 1e-5, (float(loss_lbl), float(ref))

    # 3) class_weights path (validated against a weighted reference)
    cw = jnp.array([0.5, 1.0, 2.0, 1.5], dtype=jnp.float32)
    loss_cw = jax.block_until_ready(
        modded_dice_loss(logits, targets, class_weights=cw))
    ref_cw = _reference_loss(logits, targets, class_weights=cw)
    assert abs(float(loss_cw) - float(ref_cw)) < 1e-5, (float(loss_cw), float(ref_cw))

    # 4) absent-channel path (the torch `continue`)
    label_ids2 = jnp.minimum(label_ids, C - 2)
    targets2 = jax.nn.one_hot(label_ids2, C, dtype=jnp.float32)
    loss2 = jax.block_until_ready(modded_dice_loss(logits, targets2))
    ref2 = _reference_loss(logits, targets2)
    assert abs(float(loss2) - float(ref2)) < 1e-5, (float(loss2), float(ref2))

    # 5) bf16 logits: halves the dominant HBM stream; kernel upcasts in VMEM
    loss_bf16 = jax.block_until_ready(
        modded_dice_loss(logits.astype(jnp.bfloat16), targets))
    assert jnp.isfinite(loss_bf16), "bf16 loss is not finite"
    assert abs(float(loss_bf16) - float(ref)) < 5e-2, (float(loss_bf16), float(ref))

    print("KERNEL_OK")
</pallas_src>

<mosaic_0001>
module attributes {stable_mosaic.version = 11 : i64} {
  func.func @_dice_sums_kernel(%arg0: i32, %arg1: i32, %arg2: memref<1x4x256xf32, #tpu.memory_space<vmem>>, %arg3: memref<1x1x256xi32, #tpu.memory_space<vmem>>, %arg4: memref<1x4x128xf32, #tpu.memory_space<vmem>>, %arg5: memref<1x4x128xf32, #tpu.memory_space<vmem>>, %arg6: memref<1x4x128xf32, #tpu.memory_space<vmem>>) attributes {dimension_semantics = [#tpu.dimension_semantics<parallel>, #tpu.dimension_semantics<arbitrary>], iteration_bounds = array<i64: 2, 1>, scalar_prefetch = 0 : i64, scratch_operands = 0 : i64, tpu.core_type = #tpu.core_type<tc>, window_params = [{transform_indices = @transform_0, window_bounds = array<i64: 1, 4, 256>}, {transform_indices = @transform_1, window_bounds = array<i64: 1, 1, 256>}, {transform_indices = @transform_2, window_bounds = array<i64: 1, 4, 128>}, {transform_indices = @transform_3, window_bounds = array<i64: 1, 4, 128>}, {transform_indices = @transform_4, window_bounds = array<i64: 1, 4, 128>}]} {
    %c0_i32 = arith.constant 0 : i32
    %0 = arith.cmpi eq, %arg1, %c0_i32 : i32
    %1 = arith.extui %0 : i1 to i32
    %c0_i32_0 = arith.constant 0 : i32
    %2 = arith.cmpi ne, %1, %c0_i32_0 : i32
    scf.if %2 {
      %cst_28 = arith.constant 0.000000e+00 : f32
      %53 = vector.broadcast %cst_28 : f32 to vector<1x4x128xf32>
      %c0_29 = arith.constant 0 : index
      %c0_30 = arith.constant 0 : index
      %c0_31 = arith.constant 0 : index
      %54 = vector.load %arg4[%c0_29, %c0_30, %c0_31] : memref<1x4x128xf32, #tpu.memory_space<vmem>>, vector<1x4x128xf32>
      tpu.vector_store %arg4[%c0_29, %c0_30, %c0_31], %53 {strides = array<i32>} : memref<1x4x128xf32, #tpu.memory_space<vmem>>, vector<1x4x128xf32>,
      %cst_32 = arith.constant 0.000000e+00 : f32
      %55 = vector.broadcast %cst_32 : f32 to vector<1x4x128xf32>
      %c0_33 = arith.constant 0 : index
      %c0_34 = arith.constant 0 : index
      %c0_35 = arith.constant 0 : index
      %56 = vector.load %arg5[%c0_33, %c0_34, %c0_35] : memref<1x4x128xf32, #tpu.memory_space<vmem>>, vector<1x4x128xf32>
      tpu.vector_store %arg5[%c0_33, %c0_34, %c0_35], %55 {strides = array<i32>} : memref<1x4x128xf32, #tpu.memory_space<vmem>>, vector<1x4x128xf32>,
      %cst_36 = arith.constant 0.000000e+00 : f32
      %57 = vector.broadcast %cst_36 : f32 to vector<1x4x128xf32>
      %c0_37 = arith.constant 0 : index
      %c0_38 = arith.constant 0 : index
      %c0_39 = arith.constant 0 : index
      %58 = vector.load %arg6[%c0_37, %c0_38, %c0_39] : memref<1x4x128xf32, #tpu.memory_space<vmem>>, vector<1x4x128xf32>
      tpu.vector_store %arg6[%c0_37, %c0_38, %c0_39], %57 {strides = array<i32>} : memref<1x4x128xf32, #tpu.memory_space<vmem>>, vector<1x4x128xf32>,
    } else {
    }
    %c0 = arith.constant 0 : index
    %c0_1 = arith.constant 0 : index
    %c0_2 = arith.constant 0 : index
    %3 = vector.load %arg2[%c0, %c0_1, %c0_2] : memref<1x4x256xf32, #tpu.memory_space<vmem>>, vector<1x4x256xf32>
    %4 = vector.shape_cast %3 : vector<1x4x256xf32> to vector<4x256xf32>
    %cst = arith.constant dense<0xFF800000> : vector<256xf32>
    %5 = vector.multi_reduction <maximumf>, %4, %cst [0] : vector<4x256xf32> to vector<256xf32>
    %6 = vector.shape_cast %5 : vector<256xf32> to vector<1x256xf32>
    %7 = vector.broadcast %6 : vector<1x256xf32> to vector<4x256xf32>
    %8 = arith.subf %4, %7 : vector<4x256xf32>
    %9 = math.exp %8 : vector<4x256xf32>
    %cst_3 = arith.constant dense<0.000000e+00> : vector<256xf32>
    %10 = vector.multi_reduction <add>, %9, %cst_3 [0] : vector<4x256xf32> to vector<256xf32>
    %11 = vector.shape_cast %10 : vector<256xf32> to vector<1x256xf32>
    %12 = tpu.reciprocal %11 : vector<1x256xf32> -> vector<1x256xf32>
    %13 = vector.broadcast %12 : vector<1x256xf32> to vector<4x256xf32>
    %14 = arith.mulf %9, %13 : vector<4x256xf32>
    %c0_4 = arith.constant 0 : index
    %c0_5 = arith.constant 0 : index
    %c0_6 = arith.constant 0 : index
    %15 = vector.load %arg3[%c0_4, %c0_5, %c0_6] : memref<1x1x256xi32, #tpu.memory_space<vmem>>, vector<1x1x256xi32>
    %16 = vector.shape_cast %15 : vector<1x1x256xi32> to vector<1x256xi32>
    %17 = tpu.iota {dimensions = array<i32: 0>} : vector<4x1xi32>
    %18 = vector.broadcast %17 : vector<4x1xi32> to vector<4x256xi32>
    %19 = vector.broadcast %16 : vector<1x256xi32> to vector<4x256xi32>
    %20 = arith.cmpi eq, %18, %19 : vector<4x256xi32>
    %cst_7 = arith.constant 0.000000e+00 : f32
    %21 = vector.broadcast %cst_7 : f32 to vector<4x256xf32>
    %22 = arith.select %20, %14, %21 : vector<4x256xi1>, vector<4x256xf32>
    %cst_8 = arith.constant 1.000000e+00 : f32
    %cst_9 = arith.constant 0.000000e+00 : f32
    %23 = vector.broadcast %cst_8 : f32 to vector<4x256xf32>
    %24 = vector.broadcast %cst_9 : f32 to vector<4x256xf32>
    %25 = arith.select %20, %23, %24 : vector<4x256xi1>, vector<4x256xf32>
    %c0_10 = arith.constant 0 : index
    %c0_11 = arith.constant 0 : index
    %c0_12 = arith.constant 0 : index
    %26 = vector.load %arg4[%c0_10, %c0_11, %c0_12] : memref<1x4x128xf32, #tpu.memory_space<vmem>>, vector<1x4x128xf32>
    %27 = vector.shape_cast %26 : vector<1x4x128xf32> to vector<4x128xf32>
    %28 = vector.extract_strided_slice %22 {offsets = [0, 0], sizes = [4, 128], strides = [1, 1]} : vector<4x256xf32> to vector<4x128xf32>
    %29 = vector.extract_strided_slice %22 {offsets = [0, 128], sizes = [4, 128], strides = [1, 1]} : vector<4x256xf32> to vector<4x128xf32>
    %30 = arith.addf %28, %29 : vector<4x128xf32>
    %31 = arith.addf %27, %30 : vector<4x128xf32>
    %c0_13 = arith.constant 0 : index
    %c0_14 = arith.constant 0 : index
    %c0_15 = arith.constant 0 : index
    %32 = vector.load %arg4[%c0_13, %c0_14, %c0_15] : memref<1x4x128xf32, #tpu.memory_space<vmem>>, vector<1x4x128xf32>
    %33 = vector.shape_cast %32 : vector<1x4x128xf32> to vector<4x128xf32>
    %34 = vector.shape_cast %31 : vector<4x128xf32> to vector<1x4x128xf32>
    tpu.vector_store %arg4[%c0_13, %c0_14, %c0_15], %34 {strides = array<i32>} : memref<1x4x128xf32, #tpu.memory_space<vmem>>, vector<1x4x128xf32>,
    %c0_16 = arith.constant 0 : index
    %c0_17 = arith.constant 0 : index
    %c0_18 = arith.constant 0 : index
    %35 = vector.load %arg5[%c0_16, %c0_17, %c0_18] : memref<1x4x128xf32, #tpu.memory_space<vmem>>, vector<1x4x128xf32>
    %36 = vector.shape_cast %35 : vector<1x4x128xf32> to vector<4x128xf32>
    %37 = vector.extract_strided_slice %14 {offsets = [0, 0], sizes = [4, 128], strides = [1, 1]} : vector<4x256xf32> to vector<4x128xf32>
    %38 = vector.extract_strided_slice %14 {offsets = [0, 128], sizes = [4, 128], strides = [1, 1]} : vector<4x256xf32> to vector<4x128xf32>
    %39 = arith.addf %37, %38 : vector<4x128xf32>
    %40 = arith.addf %36, %39 : vector<4x128xf32>
    %c0_19 = arith.constant 0 : index
    %c0_20 = arith.constant 0 : index
    %c0_21 = arith.constant 0 : index
    %41 = vector.load %arg5[%c0_19, %c0_20, %c0_21] : memref<1x4x128xf32, #tpu.memory_space<vmem>>, vector<1x4x128xf32>
    %42 = vector.shape_cast %41 : vector<1x4x128xf32> to vector<4x128xf32>
    %43 = vector.shape_cast %40 : vector<4x128xf32> to vector<1x4x128xf32>
    tpu.vector_store %arg5[%c0_19, %c0_20, %c0_21], %43 {strides = array<i32>} : memref<1x4x128xf32, #tpu.memory_space<vmem>>, vector<1x4x128xf32>,
    %c0_22 = arith.constant 0 : index
    %c0_23 = arith.constant 0 : index
    %c0_24 = arith.constant 0 : index
    %44 = vector.load %arg6[%c0_22, %c0_23, %c0_24] : memref<1x4x128xf32, #tpu.memory_space<vmem>>, vector<1x4x128xf32>
    %45 = vector.shape_cast %44 : vector<1x4x128xf32> to vector<4x128xf32>
    %46 = vector.extract_strided_slice %25 {offsets = [0, 0], sizes = [4, 128], strides = [1, 1]} : vector<4x256xf32> to vector<4x128xf32>
    %47 = vector.extract_strided_slice %25 {offsets = [0, 128], sizes = [4, 128], strides = [1, 1]} : vector<4x256xf32> to vector<4x128xf32>
    %48 = arith.addf %46, %47 : vector<4x128xf32>
    %49 = arith.addf %45, %48 : vector<4x128xf32>
    %c0_25 = arith.constant 0 : index
    %c0_26 = arith.constant 0 : index
    %c0_27 = arith.constant 0 : index
    %50 = vector.load %arg6[%c0_25, %c0_26, %c0_27] : memref<1x4x128xf32, #tpu.memory_space<vmem>>, vector<1x4x128xf32>
    %51 = vector.shape_cast %50 : vector<1x4x128xf32> to vector<4x128xf32>
    %52 = vector.shape_cast %49 : vector<4x128xf32> to vector<1x4x128xf32>
    tpu.vector_store %arg6[%c0_25, %c0_26, %c0_27], %52 {strides = array<i32>} : memref<1x4x128xf32, #tpu.memory_space<vmem>>, vector<1x4x128xf32>,
    return
  }
  func.func @transform_0(%arg0: i32, %arg1: i32) -> (i32, i32, i32) {
    %c0_i32 = arith.constant 0 : i32
    %c0_i32_0 = arith.constant 0 : i32
    return %arg0, %c0_i32, %arg1 : i32, i32, i32
  }
  func.func @transform_1(%arg0: i32, %arg1: i32) -> (i32, i32, i32) {
    %c0_i32 = arith.constant 0 : i32
    %c0_i32_0 = arith.constant 0 : i32
    return %arg0, %c0_i32, %arg1 : i32, i32, i32
  }
  func.func @transform_2(%arg0: i32, %arg1: i32) -> (i32, i32, i32) {
    %c0_i32 = arith.constant 0 : i32
    %c0_i32_0 = arith.constant 0 : i32
    %c0_i32_1 = arith.constant 0 : i32
    return %arg0, %c0_i32, %c0_i32_0 : i32, i32, i32
  }
  func.func @transform_3(%arg0: i32, %arg1: i32) -> (i32, i32, i32) {
    %c0_i32 = arith.constant 0 : i32
    %c0_i32_0 = arith.constant 0 : i32
    %c0_i32_1 = arith.constant 0 : i32
    return %arg0, %c0_i32, %c0_i32_0 : i32, i32, i32
  }
  func.func @transform_4(%arg0: i32, %arg1: i32) -> (i32, i32, i32) {
    %c0_i32 = arith.constant 0 : i32
    %c0_i32_0 = arith.constant 0 : i32
    %c0_i32_1 = arith.constant 0 : i32
    return %arg0, %c0_i32, %c0_i32_0 : i32, i32, i32
  }
}

</mosaic_0001>

<bundles_post_ra>
// kernel: tpu_custom_call.1
= control target key start
LH: loop header
LB: loop body
LE: loop exit
PB: predicated region body
PF: predicated region fallthrough
CT: control target
= control target key end

     0   :  { %s1272_s0 = inlined_call_operand.hbm [shape: f32[2,4,256], index: 0, kind: input, shape index: {}]   ;;  %s1273_s1 = inlined_call_operand.hbm [shape: s32[2,1,256], index: 1, kind: input, shape index: {}]   ;;  %s1274_s2 = inlined_call_operand.hbm [shape: f32[2,4,128], index: 2, kind: output, shape index: {0}]   ;;  %s1275_s3 = inlined_call_operand.hbm [shape: f32[2,4,128], index: 3, kind: output, shape index: {1}]   ;;  %s1276_s4 = inlined_call_operand.hbm [shape: f32[2,4,128], index: 4, kind: output, shape index: {2}]  }
   0x1   :  { %1280 = sst [smem:[#allocation15_spill]] %s1272_s0 }
   0x2   :  { %10 = vsyncpa [#allocation3], 0 }
   0x3   :  { %12 = vsyncpa [#allocation3 + $0x1], 0 }
   0x4   :  { %13 = vsyncpa [#allocation6], 0 }
   0x5   :  { %15 = vsyncpa [#allocation6 + $0x1], 0 }
   0x6   :  { %16 = vsyncpa [#allocation4], 0 }
   0x7   :  { %18 = vsyncpa [#allocation4 + $0x1], 0 }
   0x8   :  { %19 = vsyncpa [#allocation9], 0 }
   0x9   :  { %21 = vsyncpa [#allocation9 + $0x1], 0  ;;  %s951_s15 = smov 0   ;;  %s953_s16 = smov 0  }
   0xa   :  { %s955_s17 = smov 0   ;;  %s957_s18 = smov 0  }
   0xb   :  { %s959_s19 = smov 0   ;;  %s961_s20 = smov 0  }
   0xc LB: > { %s982_s21 = sadd.s32 4294967295, %s918_s20   ;;  %s1278_s22 = sadd.s32 4294967294, %s918_s20   ;;  %s918_s20 = sphi %s961_s20, %s27_s20   ;;  %s914_s19 = sphi %s959_s19, %s1300_s19   ;;  %s910_s18 = sphi %s957_s18, %s1299_s18   ;;  %s906_s17 = sphi %s955_s17, %s1298_s17   ;;  %s902_s16 = sphi %s953_s16, %s1297_s16   ;;  %s898_s15 = sphi %s951_s15, %s1296_s15  }
   0xd   : > { %s39_s23 = sadd.s32 1, %s914_s19  ;;  %s48_s24 = sadd.s32 1, %s906_s17 }
   0xe   : > { %p41_p0 = scmp.ge.s32.totalorder %s39_s23, 2  ;;  %p55_p1 = scmp.ne.s32.totalorder %s906_s17, %s902_s16 }
   0xf   : > { %p56_p2 = scmp.eq.s32.totalorder %s918_s20, 0  ;;  %p61_p3 = scmp.ne.s32.totalorder %s902_s16, %s898_s15 }
  0x10   : > { %s1302_s23 = smov (%p41_p0, %s39_s23), 0  ;;  %p62_p5 = scmp.eq.s32.totalorder %s982_s21, 0 }
  0x11   : > { %p994_p4 = por %p56_p2, %p55_p1  ;;  %s43_s26 = ssub.s32 %s914_s19, %s1302_s23 }
  0x12   : > { %p113_p6 = scmp.eq.s32.totalorder %s982_s21, 1  ;;  %p46_p7 = scmp.eq.s32.totalorder %s43_s26, 0 }
  0x13   : > { %p1002_p8 = por %p62_p5, %p61_p3  ;;  %p119_p10 = scmp.eq.s32.totalorder %s1278_s22, 1 }
  0x14   : > { %p1006_p9 = por %p113_p6, %p55_p1  ;;  %p654_p13 = scmp.lt.s32.totalorder %s918_s20, 2 }
  0x15   : > { %s1282_s27 = scalar_select %p1002_p8, 1, 0 }
  0x16   : > { %s1283_s28 = scalar_select %p1006_p9, 1, 0 }
  0x17   : > { %s1013_s29 = scalar_select %p46_p7, %s906_s17, %s48_s24  }
  0x18   : > { %p1015_p11 = por %p119_p10, %p61_p3  ;;  %s1022_s5 = sand.u32 1, %s906_s17  }
  0x19   : > { %s605_s6 = sshll.u32 %s1022_s5, 3  ;;  %s625_s7 = sshll.u32 %s914_s19, 7 }
  0x1a   : > { %s1284_s30 = scalar_select %p1015_p11, 1, 0 }
  0x1b   : > { %s1285_s0 = sld [smem:[#allocation15_spill]]  ;;  %s195_s11 = scalar_lea.vmem [#allocation2], %s605_s6 }
  0x1c   : > { %s205_s12 = sshll.u32 %s195_s11, 4  ;;  %p1035_p0 = pnand %p654_p13, %p994_p4  ;;  %s1031_s12 = int_to_ptr.vmem [resolvable:$true] %s205_s12 }
  0x1d   : > { %s192_s14 = scalar_lea.sflag [#allocation3], %s1022_s5 }
  0x1e   : > { %p714_p5 = pneg %p1035_p0 }
  0x21   : > { %s1029_s10 = scalar_lea.hbm %s1285_s0, %s625_s7  ;;  %s717_s25 = scalar_lea.hbm %s1285_s0, 256 }
  0x22   : > { %s712_s24 = scalar_lea.hbm %s1029_s10, 128  ;;  %p718_p4 = scmp.lt.u32.totalorder %s1029_s10, %s1285_s0 }
  0x23   : > { %p713_p3 = scmp.ne.s32.totalorder %s1029_s10, %s712_s24  ;;  %p719_p10 = scmp.lt.u32.totalorder %s717_s25, %s712_s24 }
  0x24   : > { %p721_p12 = scmp.lt.u32.totalorder %s712_s24, %s1029_s10 }
  0x25   : > { %p715_p6 = pnand %p714_p5, %p713_p3  ;;  %p720_p13 = por %p719_p10, %p718_p4 }
  0x27   : > { %p716_p7 = pneg %p715_p6  ;;  %p722_p1 = por %p721_p12, %p720_p13 }
  0x29   : > { %p723_p2 = pnand %p722_p1, %p716_p7 }
  0x2b   : > { %726 = shalt.err (!%p723_p2)
}
  0x2c   : > { %s727_s9 = scalar_lea.vmem %s1031_s12, 128  ;;  %s920_s11 = smov [#allocation2]  }
  0x2d   : > { %p728_p3 = scmp.ne.s32.totalorder %s1031_s12, %s727_s9  ;;  %s732_s26 = sshll.u32 %s920_s11, 4  ;;  %s733_s26 = int_to_ptr.vmem [resolvable:$false] %s732_s26 }
  0x2e   : > { %s734_s6 = scalar_lea.vmem %s733_s26, 256  ;;  %p735_p9 = scmp.lt.s32.totalorder %s1031_s12, %s733_s26 }
  0x2f   : > { %p730_p6 = pnand %p728_p3, %p714_p5  ;;  %p736_p4 = scmp.lt.s32.totalorder %s734_s6, %s727_s9 }
  0x31   : > { %p731_p11 = pneg %p730_p6  ;;  %p737_p10 = por %p736_p4, %p735_p9 }
  0x33   : > { %p738_p12 = pnand %p737_p10, %p731_p11 }
  0x35   : > { %741 = shalt.err (!%p738_p12)
}
  0x36   : > { %640 = dma.hbm_to_vmem [thread:$0]  (!%p1035_p0), %s1029_s10, 128, %s1031_s12, %s192_s14  }
  0x37   : > { %p1287_p1 = scmp.lt.s32.totalorder %s918_s20, 3  ;;  %p1288_p2 = scmp.ge.s32.totalorder %s918_s20, 1 }
  0x38   : > { %s608_s25 = sshll.u32 %s1022_s5, 1  ;;  %s626_s7 = sshll.u32 %s914_s19, 5 }
  0x39   : > { %p1071_p7 = pnand %p1288_p2, %p1287_p1  ;;  %s1080_s11 = scalar_lea.hbm %s1273_s1, %s626_s7 }
  0x3a   : > { %s216_s26 = scalar_lea.vmem [#allocation5], %s608_s25  ;;  %s213_s10 = scalar_lea.sflag [#allocation6], %s1022_s5 }
  0x3b   : > { %s1289_s24 = scalar_select %p1071_p7, 1, 0 }
  0x3c   : > { %s226_s6 = sshll.u32 %s216_s26, 4  ;;  %s742_s12 = scalar_lea.hbm %s1080_s11, 32  ;;  %s227_s6 = int_to_ptr.vmem [resolvable:$true] %s226_s6 }
  0x3d   : > { %p743_p9 = scmp.ne.s32.totalorder %s1080_s11, %s742_s12  ;;  %s747_s8 = scalar_lea.hbm %s1273_s1, 64 }
  0x3e   : > { %p748_p3 = scmp.lt.u32.totalorder %s1080_s11, %s1273_s1  ;;  %p749_p6 = scmp.lt.u32.totalorder %s747_s8, %s742_s12 }
  0x3f   : > { %p745_p11 = pnand %p743_p9, %p714_p5  ;;  %p751_p10 = scmp.lt.u32.totalorder %s742_s12, %s1080_s11 }
  0x40   : > { %p750_p4 = por %p749_p6, %p748_p3 }
  0x41   : > { %p746_p13 = pneg %p745_p11 }
  0x42   : > { %p752_p12 = por %p751_p10, %p750_p4 }
  0x44   : > { %p753_p1 = pnand %p752_p12, %p746_p13 }
  0x46   : > { %756 = shalt.err (!%p753_p1)
}
  0x47   : > { %s757_s5 = scalar_lea.vmem %s227_s6, 32  ;;  %s921_s25 = smov [#allocation5]  }
  0x48   : > { %p758_p2 = scmp.ne.s32.totalorder %s227_s6, %s757_s5  ;;  %s762_s22 = sshll.u32 %s921_s25, 4  ;;  %s763_s22 = int_to_ptr.vmem [resolvable:$false] %s762_s22 }
  0x49   : > { %s764_s26 = scalar_lea.vmem %s763_s22, 64  ;;  %p765_p8 = scmp.lt.s32.totalorder %s227_s6, %s763_s22 }
  0x4a   : > { %p760_p9 = pnand %p758_p2, %p714_p5  ;;  %p766_p7 = scmp.lt.s32.totalorder %s764_s26, %s757_s5 }
  0x4c   : > { %p761_p11 = pneg %p760_p9  ;;  %p767_p3 = por %p766_p7, %p765_p8 }
  0x4e   : > { %p768_p6 = pnand %p767_p3, %p761_p11 }
  0x50   : > { %771 = shalt.err (!%p768_p6)
}
  0x51   : > { %643 = dma.hbm_to_vmem [thread:$0]  (!%p1035_p0), %s1080_s11, 32, %s227_s6, %s213_s10  }
  0x52   : > { %p1290_p13 = scmp.ne.s32.totalorder %s1289_s24, 0 }
  0x53   : > { %s1105_s12 = sand.u32 (!%p1290_p13), 1, %s902_s16   ;;  %p1291_p5 = scmp.ne.s32.totalorder (!%p1290_p13), %s1282_s27, 0 }
  0x54   : > { %235 = sbr.rel (%p1290_p13) target bundleno = 224 (0xe0), region = 28  ;;  %s612_s14 = sshll.u32 (!%p1290_p13), %s1105_s12, 3 }
  0x55   : > { %s238_s8 = scalar_lea.sflag (!%p1290_p13), [#allocation3], %s1105_s12  ;;  %s241_s7 = scalar_lea.vmem (!%p1290_p13), [#allocation2], %s612_s14 }
  0x5b   : > { %881 = dma.done.wait (%p1291_p5), %s238_s8, 128  }
  0x5c   : > { %883 = vsyncadd (%p1291_p5), %s238_s8, 4294967168  ;;  %s613_s13 = sshll.u32 %s1105_s12, 1  ;;  %s247_s24 = scalar_lea.sflag [#allocation6], %s1105_s12 }
  0x5d   : > { %s250_s11 = scalar_lea.vmem [#allocation5], %s613_s13 }
  0x5e   : > { %885 = dma.done.wait (%p1291_p5), %s247_s24, 32  }
  0x5f   : > { %887 = vsyncadd (%p1291_p5), %s247_s24, 4294967264  ;;  %s614_s6 = sshll.u32 %s1105_s12, 2  ;;  %v350_v0 = vlaneseq  ;;  %v922_v1 = vmov 0.0   ;;  %vm303_vm0 = vcmask 1043456   ;;  %v299_v5 = vld [vmem:[%s241_s7] sm:$0xff]  ;;  %s388_s27 = sand.u32 1, %s982_s21  }
  0x60   : > { %s1120_s10 = scalar_lea.vmem [#allocation8], %s614_s6  ;;  %s1123_s9 = scalar_lea.vmem [#allocation7], %s614_s6  ;;  %v349_v6 = vld [vmem:[%s250_s11] sm:$0x3]  ;;  %v301_v7 = vcombine.high %v299_v5, %v299_v5  ;;  %v304_v8 = vsel %vm303_vm0, %v299_v5, -inf }
  0x61   : > { %297 = vst [vmem:[%s1120_s10] sm:$0xf] %v922_v1  ;;  %296 = vst [vmem:[%s1123_s9] sm:$0xf] %v922_v1  ;;  %v1126_v2 = vshrl.u32 %v350_v0, 7  ;;  %s1128_s5 = scalar_lea.vmem [#allocation10], %s614_s6  ;;  %v305_v11 = vrot.slane %v304_v8, 4  ;;  %s620_s25 = sshll.u32 %s910_s18, 6 }
  0x62   : > { %298 = vst [vmem:[%s1128_s5] sm:$0xf] %v922_v1  ;;  %v311_v12 = vsel %vm303_vm0, %v301_v7, -inf  ;;  %s420_s22 = sshll.u32 %s1120_s10, 4  ;;  %s407_s26 = sshll.u32 %s1123_s9, 4  ;;  %s1161_s22 = int_to_ptr.vmem [resolvable:$true] %s420_s22  ;;  %s1168_s26 = int_to_ptr.vmem [resolvable:$true] %s407_s26 }
  0x63   : > { %v354_v3 = vsub.s32 0, %v1126_v2  ;;  %v358_v4 = vsub.s32 1, %v1126_v2  ;;  %v306_v13 = vmax.f32 %v304_v8, %v305_v11  ;;  %v312_v14 = vrot.slane %v311_v12, 4  ;;  %s433_s14 = sshll.u32 %s1128_s5, 4  ;;  %s1159_s7 = scalar_lea.hbm %s1275_s3, %s620_s25  ;;  %s1170_s14 = int_to_ptr.vmem [resolvable:$true] %s433_s14 }
  0x64   : > { %s1166_s24 = scalar_lea.hbm %s1274_s2, %s620_s25  ;;  %s1179_s21 = scalar_lea.sflag [#allocation9], %s388_s27 }
  0x65   : > { %v355_v9 = vrot.slane %v349_v6, %v354_v3  ;;  %v359_v10 = vrot.slane %v349_v6, %v358_v4  ;;  %v307_v19 = vrot.slane %v306_v13, 2  ;;  %v313_v20 = vmax.f32 %v311_v12, %v312_v14  ;;  %s772_s8 = scalar_lea.vmem %s1161_s22, 64  ;;  %p1292_p0 = scmp.ne.s32.totalorder %s1283_s28, 0 }
  0x66   : > { %p773_p8 = scmp.ne.s32.totalorder %s1161_s22, %s772_s8  ;;  %s923_s18 = smov [#allocation8]  }
  0x67   : > { %vm360_vm1 = vcmp.eq.s32.totalorder %v1126_v2, %v355_v9  ;;  %vm361_vm2 = vcmp.eq.s32.totalorder %v1126_v2, %v359_v10  ;;  %v308_v22 = vmax.f32 %v306_v13, %v307_v19  ;;  %v314_v23 = vrot.slane %v313_v20, 2  ;;  %s776_s13 = sshll.u32 %s923_s18, 4  ;;  %s777_s13 = int_to_ptr.vmem [resolvable:$false] %s776_s13 }
  0x68   : > { %v367_v15 = vsel %vm360_vm1, 1.0, %v922_v1  ;;  %v368_v16 = vsel %vm361_vm2, 1.0, %v922_v1  ;;  %v373_v55 = vld [vmem:[%s1120_s10] sm:$0xf]  ;;  %v369_v58 = vld [vmem:[%s1123_s9] sm:$0xf]  ;;  %p774_p7 = pnand %p773_p8, %p1292_p0  ;;  %p779_p10 = scmp.lt.s32.totalorder %s1161_s22, %s777_s13 }
  0x69   : > { %v379_v17 = vld [vmem:[%s1128_s5] sm:$0xf]  ;;  %v380_v18 = vadd.f32 %v368_v16, %v367_v15  ;;  %v309_v24 = vrot.slane %v308_v22, 1  ;;  %v315_v25 = vmax.f32 %v313_v20, %v314_v23  ;;  %s778_s0 = scalar_lea.vmem %s777_s13, 128 }
  0x6a   : > { %p775_p4 = pneg %p774_p7  ;;  %p780_p12 = scmp.lt.s32.totalorder %s778_s0, %s772_s8 }
  0x6b   : > { %v381_v21 = vadd.f32 %v380_v18, %v379_v17  ;;  %v310_v26 = vmax.f32 %v308_v22, %v309_v24  ;;  %v316_v27 = vrot.slane %v315_v25, 1 }
  0x6c   : > { %p781_p1 = por %p780_p12, %p779_p10 }
  0x6d   : > { %382 = vst [vmem:[%s1128_s5] sm:$0xf] %v381_v21  ;;  %v317_v28 = vmax.f32 %v315_v25, %v316_v27  ;;  %s1176_s5 = scalar_lea.hbm %s1276_s4, %s620_s25 }
  0x6e   : > { %p782_p2 = pnand %p781_p1, %p775_p4 }
  0x6f   : > { %v320_v29 = vcombine.low %v310_v26, %v317_v28 }
  0x71   : > { %v322_v30 = vsub.f32 %v299_v5, %v320_v29 }
  0x73   : > { %v323_v31 = vmul.f32 1.442695, %v322_v30 }
  0x75   : > { %706 = vpow2.f32 %v323_v31 }
  0x7f   : > { %v707_v32 = vpop.eup %706 }
  0x80   : > { %v326_v33 = vcombine.high %v707_v32, %v707_v32  ;;  %v328_v34 = vsel %vm303_vm0, %v707_v32, 0.0 }
  0x81   : > { %v329_v35 = vrot.slane %v328_v34, 4 }
  0x82   : > { %v335_v36 = vsel %vm303_vm0, %v326_v33, 0.0 }
  0x83   : > { %v330_v37 = vadd.f32 %v329_v35, %v328_v34  ;;  %v336_v38 = vrot.slane %v335_v36, 4 }
  0x85   : > { %v331_v39 = vrot.slane %v330_v37, 2  ;;  %v337_v40 = vadd.f32 %v336_v38, %v335_v36 }
  0x87   : > { %v332_v41 = vadd.f32 %v331_v39, %v330_v37  ;;  %v338_v42 = vrot.slane %v337_v40, 2 }
  0x89   : > { %v333_v43 = vrot.slane %v332_v41, 1  ;;  %v339_v44 = vadd.f32 %v338_v42, %v337_v40 }
  0x8b   : > { %v334_v45 = vadd.f32 %v333_v43, %v332_v41  ;;  %v340_v46 = vrot.slane %v339_v44, 1 }
  0x8d   : > { %v341_v47 = vadd.f32 %v340_v46, %v339_v44  ;;  %708 = vrcp.f32 %v334_v45 }
  0x8f   : > { %710 = vrcp.f32 %v341_v47 }
  0x97   : > { %v709_v48 = vpop.eup %708 }
  0x99   : > { %v711_v49 = vpop.eup %710 }
  0x9a   : > { %v346_v50 = vcombine.low %v709_v48, %v711_v49 }
  0x9c   : > { %v348_v51 = vmul.f32 %v707_v32, %v346_v50 }
  0x9e   : > { %v374_v52 = vrot.slane %v348_v51, 4  ;;  %v363_v53 = vcombine.high %v348_v51, %v348_v51  ;;  %v365_v54 = vsel %vm360_vm1, %v348_v51, 0.0 }
  0xa0   : > { %v376_v56 = vadd.f32 %v374_v52, %v348_v51  ;;  %v366_v57 = vsel %vm361_vm2, %v363_v53, 0.0 }
  0xa1   : > { %v370_v59 = vadd.f32 %v366_v57, %v365_v54 }
  0xa2   : > { %v377_v60 = vadd.f32 %v376_v56, %v373_v55 }
  0xa3   : > { %v371_v61 = vadd.f32 %v370_v59, %v369_v58 }
  0xa4   : > { %378 = vst [vmem:[%s1120_s10] sm:$0xf] %v377_v60 }
  0xa5   : > { %372 = vst [vmem:[%s1123_s9] sm:$0xf] %v371_v61 }
  0xa6   : > { %785 = shalt.err (!%p782_p2)
}
  0xa7   : > { %s786_s10 = scalar_lea.hbm %s1159_s7, 64  ;;  %s790_s25 = scalar_lea.hbm %s1275_s3, 128 }
  0xa8   : > { %p787_p9 = scmp.ne.s32.totalorder %s1159_s7, %s786_s10  ;;  %p791_p6 = scmp.lt.u32.totalorder %s1159_s7, %s1275_s3 }
  0xa9   : > { %p792_p13 = scmp.lt.u32.totalorder %s790_s25, %s786_s10  ;;  %p794_p8 = scmp.lt.u32.totalorder %s786_s10, %s1159_s7 }
  0xaa   : > { %p788_p11 = pnand %p787_p9, %p1292_p0 }
  0xab   : > { %p793_p5 = por %p792_p13, %p791_p6 }
  0xac   : > { %p789_p3 = pneg %p788_p11 }
  0xad   : > { %p795_p7 = por %p794_p8, %p793_p5 }
  0xaf   : > { %p796_p4 = pnand %p795_p7, %p789_p3 }
  0xb1   : > { %799 = shalt.err (!%p796_p4)
}
  0xb2   : > { %632 = dma.vmem_to_hbm [thread:$0]  (%p1292_p0), %s1161_s22, 64, %s1159_s7, %s1179_s21  }
  0xb3   : > { %s384_s0 = scalar_lea.sflag [#allocation4], %s1105_s12  ;;  %s800_s8 = scalar_lea.vmem %s1168_s26, 64 }
  0xb4   : > { %p801_p10 = scmp.ne.s32.totalorder %s1168_s26, %s800_s8  ;;  %s924_s18 = smov [#allocation7]  }
  0xb5   : > { %s804_s13 = sshll.u32 %s924_s18, 4  ;;  %s805_s13 = int_to_ptr.vmem [resolvable:$false] %s804_s13 }
  0xb6   : > { %p802_p12 = pnand %p801_p10, %p1292_p0  ;;  %s806_s10 = scalar_lea.vmem %s805_s13, 128 }
  0xb7   : > { %p807_p2 = scmp.lt.s32.totalorder %s1168_s26, %s805_s13  ;;  %p808_p9 = scmp.lt.s32.totalorder %s806_s10, %s800_s8 }
  0xb8   : > { %p803_p1 = pneg %p802_p12 }
  0xb9   : > { %p809_p11 = por %p808_p9, %p807_p2 }
  0xbb   : > { %p810_p3 = pnand %p809_p11, %p803_p1 }
  0xbd   : > { %813 = shalt.err (!%p810_p3)
}
  0xbe   : > { %s814_s12 = scalar_lea.hbm %s1166_s24, 64  ;;  %s818_s9 = scalar_lea.hbm %s1274_s2, 128 }
  0xbf   : > { %p815_p6 = scmp.ne.s32.totalorder %s1166_s24, %s814_s12  ;;  %p819_p8 = scmp.lt.u32.totalorder %s1166_s24, %s1274_s2 }
  0xc0   : > { %p820_p7 = scmp.lt.u32.totalorder %s818_s9, %s814_s12  ;;  %p822_p10 = scmp.lt.u32.totalorder %s814_s12, %s1166_s24 }
  0xc1   : > { %p816_p13 = pnand %p815_p6, %p1292_p0 }
  0xc2   : > { %p821_p4 = por %p820_p7, %p819_p8 }
  0xc3   : > { %p817_p5 = pneg %p816_p13 }
  0xc4   : > { %p823_p12 = por %p822_p10, %p821_p4 }
  0xc6   : > { %p824_p1 = pnand %p823_p12, %p817_p5 }
  0xc8   : > { %827 = shalt.err (!%p824_p1)
}
  0xc9   : > { %631 = dma.vmem_to_hbm [thread:$0]  (%p1292_p0), %s1168_s26, 64, %s1166_s24, %s384_s0  }
  0xca   : > { %s828_s11 = scalar_lea.vmem %s1170_s14, 64  ;;  %s925_s6 = smov [#allocation10]  }
  0xcb   : > { %p829_p2 = scmp.ne.s32.totalorder %s1170_s14, %s828_s11  ;;  %s832_s8 = sshll.u32 %s925_s6, 4  ;;  %s833_s8 = int_to_ptr.vmem [resolvable:$false] %s832_s8 }
  0xcc   : > { %s834_s18 = scalar_lea.vmem %s833_s8, 128  ;;  %p835_p3 = scmp.lt.s32.totalorder %s1170_s14, %s833_s8 }
  0xcd   : > { %p830_p9 = pnand %p829_p2, %p1292_p0  ;;  %p836_p6 = scmp.lt.s32.totalorder %s834_s18, %s828_s11 }
  0xcf   : > { %p831_p11 = pneg %p830_p9  ;;  %p837_p13 = por %p836_p6, %p835_p3 }
  0xd1   : > { %p838_p5 = pnand %p837_p13, %p831_p11 }
  0xd3   : > { %841 = shalt.err (!%p838_p5)
}
  0xd4   : > { %s842_s26 = scalar_lea.hbm %s1176_s5, 64  ;;  %s846_s13 = scalar_lea.hbm %s1276_s4, 128 }
  0xd5   : > { %p843_p8 = scmp.ne.s32.totalorder %s1176_s5, %s842_s26  ;;  %p847_p10 = scmp.lt.u32.totalorder %s1176_s5, %s1276_s4 }
  0xd6   : > { %p848_p12 = scmp.lt.u32.totalorder %s846_s13, %s842_s26  ;;  %p850_p2 = scmp.lt.u32.totalorder %s842_s26, %s1176_s5 }
  0xd7   : > { %p844_p7 = pnand %p843_p8, %p1292_p0 }
  0xd8   : > { %p849_p1 = por %p848_p12, %p847_p10 }
  0xd9   : > { %p845_p4 = pneg %p844_p7 }
  0xda   : > { %p851_p9 = por %p850_p2, %p849_p1 }
  0xdc   : > { %p852_p11 = pnand %p851_p9, %p845_p4 }
  0xde   : > { %855 = shalt.err (!%p852_p11)
}
  0xdf   : > { %633 = dma.vmem_to_hbm [thread:$0]  (%p1292_p0), %s1170_s14, 64, %s1176_s5, %s1179_s21  }
  0xe0 PF: > { %s445_s22 = sand.u32 1, %s898_s15   ;;  %p1293_p3 = scmp.ne.s32.totalorder %s1284_s30, 0 }
  0xe1   : > { %p1294_p6 = scmp.ge.s32.totalorder %s918_s20, 2  ;;  %s446_s7 = scalar_lea.sflag [#allocation4], %s445_s22 }
  0xe3   : > { %p645_p13 = pnand %p1294_p6, %p1293_p3 }
  0xe5   : > { %889 = dma.done.wait (!%p645_p13), %s446_s7, 64  }
  0xe6   : > { %891 = vsyncadd (!%p645_p13), %s446_s7, 4294967232  ;;  %s1295_s9 = sadd.s32 4294967294, %s918_s20  }
  0xe7   : > { %s454_s27 = sand.u32 1, %s1295_s9  }
  0xe8   : > { %s455_s25 = scalar_lea.sflag [#allocation9], %s454_s27 }
  0xe9   : > { %893 = dma.done.wait (!%p645_p13), %s455_s25, 128  }
  0xea   : > { %895 = vsyncadd (!%p645_p13), %s455_s25, 4294967168  ;;  %s27_s20 = sadd.s32 1, %s918_s20   ;;  %s1296_s15 = smov %s902_s16 }
  0xeb   : > { %p24_p0 = scmp.ge.s32.totalorder %s27_s20, 4   ;;  %s1297_s16 = smov %s906_s17 }
  0xec   : > { %s1298_s17 = smov %s1013_s29  ;;  %s1299_s18 = smov %s914_s19 }
  0xed   : > { %s1300_s19 = smov %s1302_s23  ;;  %26 = sbr.rel (!%p24_p0) target bundleno = 12 (0xc), region = 122 }
  0xf4   :  { %469 = vsyncpa [#allocation3], 1 }
  0xf5   :  { %471 = vsyncpa [#allocation3 + $0x1], 1 }
  0xf6   :  { %472 = vsyncpa [#allocation6], 1 }
  0xf7   :  { %474 = vsyncpa [#allocation6 + $0x1], 1 }
  0xf8   :  { %475 = vsyncpa [#allocation4], 1 }
  0xf9   :  { %477 = vsyncpa [#allocation4 + $0x1], 1 }
  0xfa   :  { %478 = vsyncpa [#allocation9], 1 }
  0xfb   :  { %480 = vsyncpa [#allocation9 + $0x1], 1 }

</bundles_post_ra>
